<compile_context>
chip_gen: v7x
topology: tpu7x:2x2x1
jax: 0.10.0
libtpu: 0.0.40
codegen_flags: <defaults>
</compile_context>

<pallas_src>
import functools

import jax
import jax.numpy as jnp
from jax.experimental import pallas as pl
from jax.experimental.pallas import tpu as pltpu


# --------------------- Fused kernel: conv (im2col matmul) + BN + ReLU ---------------------
def _fused_conv_bn_relu_kernel(p_ref, w_ref, gamma_ref, beta_ref, out_ref, *,
                               n_batch, hw, eps):
    # p_ref:     (9*C_in, N*H*W)   im2col patch matrix (lane-dense)
    # w_ref:     (C_out, 9*C_in)   conv weights, reshaped
    # gamma_ref: (C_out, 1)        BN gamma
    # beta_ref:  (C_out, 1)        BN beta
    # out_ref:   (N, C_out, H*W)   final activations (lane-dense)

    # Single MXU matmul for the whole batch: (C_out, 9*C_in) @ (9*C_in, N*H*W).
    acc = jnp.dot(w_ref[...], p_ref[...], preferred_element_type=jnp.float32)

    # Training-mode BatchNorm statistics over (N, H, W): two-pass, biased var.
    count = jnp.float32(acc.shape[1])
    mean = jnp.sum(acc, axis=1, keepdims=True) / count          # (C_out, 1)
    centered = acc - mean
    var = jnp.sum(centered * centered, axis=1, keepdims=True) / count
    scale = gamma_ref[...] * jax.lax.rsqrt(var + eps)            # (C_out, 1)

    y = jnp.maximum(centered * scale + beta_ref[...], 0.0)       # (C_out, N*H*W)

    # Lane-aligned (multiple-of-128) slices per sample; static unroll over N.
    for n in range(n_batch):
        out_ref[n] = y[:, n * hw:(n + 1) * hw].astype(out_ref.dtype)


# --------------------------------- Module wrapper ---------------------------------
def conv_bn_relu_forward(x_nchw, w_oihw, bias, gamma, beta, *, pad=1, eps=1e-5):
    """PyTorch conv_bn_relu.forward (Conv2d + training-mode BatchNorm2d + ReLU)."""
    N, C_in, H, W = x_nchw.shape
    C_out, _, KH, KW = w_oihw.shape
    HW = H * W
    KC = C_in * KH * KW

    # im2col in the wrapper: pad + 9 shifted views, ordered (c_in, kh, kw) to
    # match weight.reshape(C_out, C_in*KH*KW). Tiny tensor; XLA fuses this into
    # a single pass over the input.
    x_pad = jnp.pad(x_nchw, ((0, 0), (0, 0), (pad, pad), (pad, pad)))
    taps = [x_pad[:, :, kh:kh + H, kw:kw + W]          # each (N, C_in, H, W)
            for kh in range(KH) for kw in range(KW)]
    patches = jnp.stack(taps, axis=2)                  # (N, C_in, KH*KW, H, W)
    patches = patches.transpose(1, 2, 0, 3, 4).reshape(KC, N * HW)

    w_mat = w_oihw.reshape(C_out, KC)

    # Conv bias is algebraically cancelled by training-mode BatchNorm's mean
    # subtraction (variance unchanged), so it is dropped from the kernel.
    del bias

    kernel = functools.partial(
        _fused_conv_bn_relu_kernel, n_batch=N, hw=HW, eps=float(eps))

    out = pl.pallas_call(
        kernel,
        out_shape=jax.ShapeDtypeStruct((N, C_out, HW), jnp.float32),
        grid=(1,),
        in_specs=[
            pl.BlockSpec((KC, N * HW), lambda i: (0, 0)),
            pl.BlockSpec((C_out, KC), lambda i: (0, 0)),
            pl.BlockSpec((C_out, 1), lambda i: (0, 0)),
            pl.BlockSpec((C_out, 1), lambda i: (0, 0)),
        ],
        out_specs=pl.BlockSpec((N, C_out, HW), lambda i: (0, 0, 0)),
        compiler_params=pltpu.CompilerParams(
            dimension_semantics=("arbitrary",),
        ),
    )(patches, w_mat, gamma.reshape(C_out, 1), beta.reshape(C_out, 1))

    # (N, C_out, H*W) -> (N, C_out, H, W): contiguous reshape, no data movement.
    return out.reshape(N, C_out, H, W)


# ------------------------------ Reference (pure JAX) ------------------------------
def _reference(x_nchw, w_oihw, bias, gamma, beta, *, pad=1, eps=1e-5):
    y = jax.lax.conv_general_dilated(
        x_nchw, w_oihw, window_strides=(1, 1),
        padding=((pad, pad), (pad, pad)),
        dimension_numbers=("NCHW", "OIHW", "NCHW"),
    ) + bias[None, :, None, None]
    mean = jnp.mean(y, axis=(0, 2, 3))
    var = jnp.var(y, axis=(0, 2, 3))
    yn = (y - mean[None, :, None, None]) / jnp.sqrt(var + eps)[None, :, None, None]
    return jnp.maximum(yn * gamma[None, :, None, None] + beta[None, :, None, None], 0.0)


if __name__ == "__main__":
    N, C_in, H, W = 2, 4, 16, 16
    C_out, K, PAD = 8, 3, 1

    key = jax.random.PRNGKey(0)
    kx, kw, kb = jax.random.split(key, 3)

    x = jax.random.normal(kx, (N, C_in, H, W), dtype=jnp.float32)
    # PyTorch shapes: weight OIHW, bias (C_out,)
    w = jax.random.normal(kw, (C_out, C_in, K, K), dtype=jnp.float32) * 0.1
    b = jax.random.normal(kb, (C_out,), dtype=jnp.float32) * 0.1
    # BatchNorm2d default init: gamma=1, beta=0
    gamma = jnp.ones((C_out,), jnp.float32)
    beta = jnp.zeros((C_out,), jnp.float32)

    forward = jax.jit(functools.partial(conv_bn_relu_forward, pad=PAD))
    out = forward(x, w, b, gamma, beta)
    out = jax.block_until_ready(out)

    ref = _reference(x, w, b, gamma, beta, pad=PAD)
    assert out.shape == (N, C_out, H, W), out.shape
    assert jnp.allclose(out, ref, atol=1e-4, rtol=1e-4), float(jnp.max(jnp.abs(out - ref)))

    print("KERNEL_OK")
</pallas_src>

<mosaic_0001>
module attributes {stable_mosaic.version = 11 : i64} {
  func.func @_fused_conv_bn_relu_kernel(%arg0: i32, %arg1: memref<36x512xf32, #tpu.memory_space<vmem>>, %arg2: memref<8x36xf32, #tpu.memory_space<vmem>>, %arg3: memref<8x1xf32, #tpu.memory_space<vmem>>, %arg4: memref<8x1xf32, #tpu.memory_space<vmem>>, %arg5: memref<2x8x256xf32, #tpu.memory_space<vmem>>) attributes {dimension_semantics = [#tpu.dimension_semantics<arbitrary>], iteration_bounds = array<i64: 1>, scalar_prefetch = 0 : i64, scratch_operands = 0 : i64, tpu.core_type = #tpu.core_type<tc>, window_params = [{pipeline_mode = #tpu.pipeline_mode<synchronous>, transform_indices = @transform_0, window_bounds = array<i64: 36, 512>}, {pipeline_mode = #tpu.pipeline_mode<synchronous>, transform_indices = @transform_1, window_bounds = array<i64: 8, 36>}, {pipeline_mode = #tpu.pipeline_mode<synchronous>, transform_indices = @transform_2, window_bounds = array<i64: 8, 1>}, {pipeline_mode = #tpu.pipeline_mode<synchronous>, transform_indices = @transform_3, window_bounds = array<i64: 8, 1>}, {pipeline_mode = #tpu.pipeline_mode<synchronous>, transform_indices = @transform_4, window_bounds = array<i64: 2, 8, 256>}]} {
    %c0 = arith.constant 0 : index
    %c0_0 = arith.constant 0 : index
    %0 = vector.load %arg2[%c0, %c0_0] : memref<8x36xf32, #tpu.memory_space<vmem>>, vector<8x36xf32>
    %c0_1 = arith.constant 0 : index
    %c0_2 = arith.constant 0 : index
    %1 = vector.load %arg1[%c0_1, %c0_2] : memref<36x512xf32, #tpu.memory_space<vmem>>, vector<36x512xf32>
    %cst = arith.constant dense<0.000000e+00> : vector<8x512xf32>
    %2 = tpu.matmul %0, %1, %cst {dimension_numbers = #tpu.dot_dimension_numbers<[1], [0], [0], [1], [0, 0, 1, 1], [], []>} : vector<8x36xf32>, vector<36x512xf32>, vector<8x512xf32> -> vector<8x512xf32>
    %cst_3 = arith.constant dense<0.000000e+00> : vector<8xf32>
    %3 = vector.multi_reduction <add>, %2, %cst_3 [1] : vector<8x512xf32> to vector<8xf32>
    %4 = vector.shape_cast %3 : vector<8xf32> to vector<8x1xf32>
    %cst_4 = arith.constant 5.120000e+02 : f32
    %5 = vector.broadcast %cst_4 : f32 to vector<8x1xf32>
    %6 = arith.divf %4, %5 : vector<8x1xf32>
    %7 = vector.broadcast %6 : vector<8x1xf32> to vector<8x512xf32>
    %8 = arith.subf %2, %7 : vector<8x512xf32>
    %9 = arith.mulf %8, %8 : vector<8x512xf32>
    %cst_5 = arith.constant dense<0.000000e+00> : vector<8xf32>
    %10 = vector.multi_reduction <add>, %9, %cst_5 [1] : vector<8x512xf32> to vector<8xf32>
    %11 = vector.shape_cast %10 : vector<8xf32> to vector<8x1xf32>
    %cst_6 = arith.constant 5.120000e+02 : f32
    %12 = vector.broadcast %cst_6 : f32 to vector<8x1xf32>
    %13 = arith.divf %11, %12 : vector<8x1xf32>
    %c0_7 = arith.constant 0 : index
    %c0_8 = arith.constant 0 : index
    %14 = vector.load %arg3[%c0_7, %c0_8] : memref<8x1xf32, #tpu.memory_space<vmem>>, vector<8x1xf32>
    %cst_9 = arith.constant 9.99999974E-6 : f32
    %15 = vector.broadcast %cst_9 : f32 to vector<8x1xf32>
    %16 = arith.addf %13, %15 : vector<8x1xf32>
    %17 = math.rsqrt %16 : vector<8x1xf32>
    %18 = arith.mulf %14, %17 : vector<8x1xf32>
    %19 = vector.broadcast %18 : vector<8x1xf32> to vector<8x512xf32>
    %20 = arith.mulf %8, %19 : vector<8x512xf32>
    %c0_10 = arith.constant 0 : index
    %c0_11 = arith.constant 0 : index
    %21 = vector.load %arg4[%c0_10, %c0_11] : memref<8x1xf32, #tpu.memory_space<vmem>>, vector<8x1xf32>
    %22 = vector.broadcast %21 : vector<8x1xf32> to vector<8x512xf32>
    %23 = arith.addf %20, %22 : vector<8x512xf32>
    %cst_12 = arith.constant 0.000000e+00 : f32
    %24 = vector.broadcast %cst_12 : f32 to vector<8x512xf32>
    %25 = arith.maximumf %23, %24 : vector<8x512xf32>
    %26 = vector.extract_strided_slice %25 {offsets = [0, 0], sizes = [8, 256], strides = [1, 1]} : vector<8x512xf32> to vector<8x256xf32>
    %c0_13 = arith.constant 0 : index
    %c0_14 = arith.constant 0 : index
    %c0_15 = arith.constant 0 : index
    %27 = vector.load %arg5[%c0_13, %c0_14, %c0_15] : memref<2x8x256xf32, #tpu.memory_space<vmem>>, vector<1x8x256xf32>
    %28 = vector.shape_cast %27 : vector<1x8x256xf32> to vector<8x256xf32>
    %29 = vector.shape_cast %26 : vector<8x256xf32> to vector<1x8x256xf32>
    tpu.vector_store %arg5[%c0_13, %c0_14, %c0_15], %29 {strides = array<i32>} : memref<2x8x256xf32, #tpu.memory_space<vmem>>, vector<1x8x256xf32>,
    %30 = vector.extract_strided_slice %25 {offsets = [0, 256], sizes = [8, 256], strides = [1, 1]} : vector<8x512xf32> to vector<8x256xf32>
    %c1 = arith.constant 1 : index
    %c0_16 = arith.constant 0 : index
    %c0_17 = arith.constant 0 : index
    %31 = vector.load %arg5[%c1, %c0_16, %c0_17] : memref<2x8x256xf32, #tpu.memory_space<vmem>>, vector<1x8x256xf32>
    %32 = vector.shape_cast %31 : vector<1x8x256xf32> to vector<8x256xf32>
    %33 = vector.shape_cast %30 : vector<8x256xf32> to vector<1x8x256xf32>
    tpu.vector_store %arg5[%c1, %c0_16, %c0_17], %33 {strides = array<i32>} : memref<2x8x256xf32, #tpu.memory_space<vmem>>, vector<1x8x256xf32>,
    return
  }
  func.func @transform_0(%arg0: i32) -> (i32, i32) {
    %c0_i32 = arith.constant 0 : i32
    %c0_i32_0 = arith.constant 0 : i32
    %c0_i32_1 = arith.constant 0 : i32
    return %c0_i32, %c0_i32_0 : i32, i32
  }
  func.func @transform_1(%arg0: i32) -> (i32, i32) {
    %c0_i32 = arith.constant 0 : i32
    %c0_i32_0 = arith.constant 0 : i32
    %c0_i32_1 = arith.constant 0 : i32
    return %c0_i32, %c0_i32_0 : i32, i32
  }
  func.func @transform_2(%arg0: i32) -> (i32, i32) {
    %c0_i32 = arith.constant 0 : i32
    %c0_i32_0 = arith.constant 0 : i32
    %c0_i32_1 = arith.constant 0 : i32
    return %c0_i32, %c0_i32_0 : i32, i32
  }
  func.func @transform_3(%arg0: i32) -> (i32, i32) {
    %c0_i32 = arith.constant 0 : i32
    %c0_i32_0 = arith.constant 0 : i32
    %c0_i32_1 = arith.constant 0 : i32
    return %c0_i32, %c0_i32_0 : i32, i32
  }
  func.func @transform_4(%arg0: i32) -> (i32, i32, i32) {
    %c0_i32 = arith.constant 0 : i32
    %c0_i32_0 = arith.constant 0 : i32
    %c0_i32_1 = arith.constant 0 : i32
    %c0_i32_2 = arith.constant 0 : i32
    return %c0_i32, %c0_i32_0, %c0_i32_1 : i32, i32, i32
  }
}

</mosaic_0001>

<bundles_post_ra>
// kernel: conv_bn_relu_forward.1
= control target key start
LH: loop header
LB: loop body
LE: loop exit
PB: predicated region body
PF: predicated region fallthrough
CT: control target
= control target key end

     0   :  { %v284_v3 = vmov 0.0   ;;  %vm42_vm0 = vcmask 1043456   ;;  %vm38_vm1 = vcmask 293888   ;;  %v285_v50 = vmov 0   ;;  %s392_s0 = inlined_call_operand.vmem [shape: f32[36,512], index: 0, kind: input, shape index: {}]   ;;  %s393_s1 = inlined_call_operand.vmem [shape: f32[8,36], index: 1, kind: input, shape index: {}]   ;;  %s394_s2 = inlined_call_operand.vmem [shape: f32[8,1], index: 2, kind: input, shape index: {}]   ;;  %s395_s3 = inlined_call_operand.vmem [shape: f32[8,1], index: 3, kind: input, shape index: {}]   ;;  %s396_s4 = inlined_call_operand.vmem [shape: f32[2,8,256], index: 4, kind: output, shape index: {}]  }
   0x1   :  { %v19_v0 = vld [vmem:[%s392_s0 + $0x8] sm:$0xff]  ;;  %v18_v2 = vld [vmem:[%s392_s0] sm:$0xff]  ;;  %119 = vmatprep.mubr.f32.mxu0 %v284_v3  ;;  %190 = vmatprep.mubr.f32.mxu1 %v284_v3  ;;  %v21_v6 = vld [vmem:[%s392_s0 + $0x18] sm:$0xff] }
   0x2   :  { %v23_v1 = vld [vmem:[%s392_s0 + $0x28] sm:$0xff]  ;;  %v22_v5 = vld [vmem:[%s392_s0 + $0x20] sm:$0xff]  ;;  %v25_v7 = vld [vmem:[%s392_s0 + $0x38] sm:$0xff]  ;;  %280 = vset.pattern.permute.xlu1 %v285_v50  ;;  %281 = vset.pattern.permute.xlu0 %v285_v50 }
   0x3   :  { %v262_v4 = vpack.c.bf16 %v23_v1, %v19_v0  ;;  %v264_v8 = vpack.c.bf16 %v22_v5, %v18_v2  ;;  %v270_v9 = vpack.c.bf16 %v25_v7, %v21_v6  ;;  %v20_v10 = vld [vmem:[%s392_s0 + $0x10] sm:$0xff]  ;;  %v27_v12 = vld [vmem:[%s392_s0 + $0x48] sm:$0xff]  ;;  %v26_v15 = vld [vmem:[%s392_s0 + $0x40] sm:$0xff] }
   0x4   :  { %v24_v11 = vld [vmem:[%s392_s0 + $0x30] sm:$0xff]  ;;  %v31_v14 = vld [vmem:[%s392_s0 + $0x68] sm:$0xff]  ;;  %v30_v16 = vld [vmem:[%s392_s0 + $0x60] sm:$0xff] }
   0x5   :  { %263 = vmatprep.subr.bf16.mxu0 %v262_v4  ;;  %v272_v13 = vpack.c.bf16 %v24_v11, %v20_v10  ;;  %271 = vmatprep.subr.bf16.mxu1 %v270_v9  ;;  %v266_v17 = vpack.c.bf16 %v31_v14, %v27_v12  ;;  %v268_v18 = vpack.c.bf16 %v30_v16, %v26_v15  ;;  %v29_v19 = vld [vmem:[%s392_s0 + $0x58] sm:$0xff]  ;;  %v28_v21 = vld [vmem:[%s392_s0 + $0x50] sm:$0xff]  ;;  %v35_v25 = vld [vmem:[%s392_s0 + $0x88] sm:$0xf] }
   0x6   :  { %265 = vmatpush1.bf16.msra.mxu0 %v264_v8  ;;  %v33_v20 = vld [vmem:[%s392_s0 + $0x78] sm:$0xff]  ;;  %v32_v23 = vld [vmem:[%s392_s0 + $0x70] sm:$0xff]  ;;  %v34_v27 = vld [vmem:[%s392_s0 + $0x80] sm:$0xf] }
   0x7   :  { %273 = vmatpush1.bf16.msra.mxu1 %v272_v13  ;;  %v274_v22 = vpack.c.bf16 %v33_v20, %v29_v19  ;;  %267 = vmatprep.subr.bf16.mxu0 %v266_v17  ;;  %v276_v24 = vpack.c.bf16 %v32_v23, %v28_v21  ;;  %v37_v26 = vld [vmem:[%s392_s0 + $0x98] sm:$0xf]  ;;  %v17_v28 = vld [vmem:[%s393_s1] sm:$0xff]  ;;  %v36_v29 = vld [vmem:[%s392_s0 + $0x90] sm:$0xf] }
   0x8   :  { %v218_v54 = vld [vmem:[%s394_s2] sm:$0xff] }
   0x9   :  { %275 = vmatprep.subr.bf16.mxu1 %v274_v22  ;;  %v231_v57 = vld [vmem:[%s395_s3] sm:$0xff] }
   0xa   :  { %269 = vmatpush1.bf16.msra.mxu0 %v268_v18 }
   0xb   :  { %277 = vmatpush1.bf16.msra.mxu1 %v276_v24  ;;  %254 = vmatprep.subr.msk.mxu0 %vm42_vm0, %v35_v25 }
   0xc   :  { %257 = vmatprep.subr.msk.mxu1 %vm42_vm0, %v37_v26 }
   0xe   :  { %255 = vmatpush1.msk.msra.mxu0 %vm42_vm0, %v34_v27 }
   0xf   :  { %256 = vmatmul.mubr.msk.f32.vlgmr.msra.gmra.mrb[0].mxu0 %vm38_vm1, %v17_v28  ;;  %258 = vmatpush1.msk.msra.mxu1 %vm42_vm0, %v36_v29 }
  0x10   :  { %259 = vmatmul.mubr.msk.f32.vlgmr.msra.gmra.mrb[0].mxu1 %vm38_vm1, %v17_v28 }
  0xe2   :  { %v121_v30 = vpop.f32.mrb[0].mxu0 }
  0xe3   :  { %v123_v31 = vpop.f32.mrb[1].mxu0  ;;  %v192_v32 = vpop.f32.mrb[0].mxu1 }
  0xe4   :  { %v197_v33 = vadd.f32 %v123_v31, %v121_v30  ;;  %v194_v34 = vpop.f32.mrb[1].mxu1 }
  0xe6   :  { %v198_v35 = vadd.f32 %v197_v33, %v192_v32 }
  0xe8   :  { %v199_v36 = vadd.f32 %v198_v35, %v194_v34 }
  0xea   :  { %200 = vadd.xlane.f32.xlu0 %v199_v36 }
 0x177   :  { %v201_v37 = vpop.xlane.xlu0 %200 }
 0x178   :  { %v203_v38 = vmul.f32 0.001953125, %v201_v37 }
 0x17a   :  { %v204_v39 = vsub.f32 %v121_v30, %v203_v38  ;;  %v205_v40 = vsub.f32 %v123_v31, %v203_v38  ;;  %v206_v41 = vsub.f32 %v192_v32, %v203_v38  ;;  %v207_v42 = vsub.f32 %v194_v34, %v203_v38 }
 0x17c   :  { %v208_v43 = vmul.f32 %v204_v39, %v204_v39  ;;  %v209_v44 = vmul.f32 %v205_v40, %v205_v40  ;;  %v210_v45 = vmul.f32 %v206_v41, %v206_v41  ;;  %v211_v47 = vmul.f32 %v207_v42, %v207_v42 }
 0x17e   :  { %v212_v46 = vadd.f32 %v209_v44, %v208_v43 }
 0x180   :  { %v213_v48 = vadd.f32 %v212_v46, %v210_v45 }
 0x182   :  { %v214_v49 = vadd.f32 %v213_v48, %v211_v47 }
 0x184   :  { %215 = vadd.xlane.f32.xlu0 %v214_v49 }
 0x211   :  { %v216_v51 = vpop.xlane.xlu0 %215 }
 0x212   :  { %v217_v52 = vmul.f32 0.001953125, %v216_v51 }
 0x214   :  { %v219_v53 = vadd.f32 1e-05, %v217_v52 }
 0x216   :  { %282 = vrsqrt.f32 %v219_v53 }
 0x220   :  { %v283_v55 = vpop.eup %282 }
 0x221   :  { %v221_v56 = vmul.f32 %v283_v55, %v218_v54 }
 0x223   :  { %224 = vperm.xlu1 %280, %v221_v56  }
 0x227   :  { %234 = vperm.xlu1 %280, %v231_v57  }
 0x2a2   :  { %v225_v58 = vpop.permute.xlu1 %224 }
 0x2a3   :  { %v227_v59 = vmul.f32 %v225_v58, %v204_v39  ;;  %v228_v60 = vmul.f32 %v225_v58, %v205_v40  ;;  %v229_v61 = vmul.f32 %v225_v58, %v206_v41  ;;  %v230_v62 = vmul.f32 %v225_v58, %v207_v42 }
 0x2a6   :  { %v235_v63 = vpop.permute.xlu1 %234 }
 0x2a7   :  { %v237_v0 = vadd.f32 %v235_v63, %v227_v59  ;;  %v238_v1 = vadd.f32 %v235_v63, %v228_v60  ;;  %v239_v2 = vadd.f32 %v235_v63, %v229_v61  ;;  %v240_v3 = vadd.f32 %v235_v63, %v230_v62 }
 0x2a9   :  { %v241_v4 = vmax.f32 %v237_v0, 0.0  ;;  %v242_v5 = vmax.f32 %v238_v1, 0.0  ;;  %v243_v6 = vmax.f32 %v239_v2, 0.0  ;;  %v244_v7 = vmax.f32 %v240_v3, 0.0 }
 0x2ab   :  { %245 = vst [vmem:[%s396_s4] sm:$0xff] %v241_v4  ;;  %246 = vst [vmem:[%s396_s4 + $0x8] sm:$0xff] %v242_v5 }
 0x2ac   :  { %260 = vst [vmem:[%s396_s4 + $0x10] sm:$0xff] %v243_v6  ;;  %261 = vst [vmem:[%s396_s4 + $0x18] sm:$0xff] %v244_v7 }

</bundles_post_ra>
